<compile_context>
chip_gen: v7x
topology: tpu7x:2x2x1
jax: 0.10.0
libtpu: 0.0.40
codegen_flags: <defaults>
</compile_context>

<pallas_src>
import functools

import jax
import jax.numpy as jnp
from jax.experimental import pallas as pl
from jax.experimental.pallas import tpu as pltpu

OUT_DIM = 256  # hard-coded output width of RGCNLayer.weight in the PyTorch module


def _round_up(x, m):
    return (x + m - 1) // m * m


# ----------------------------- Pallas kernel ------------------------------- #
def _rgcn_layer_kernel(nz_ref, fi_ref, fr_ref,        # scalar-prefetch (SMEM)
                       h_ref, w_ref, gw_ref, a_ref,   # inputs (VMEM)
                       o_ref,                         # output (resident over r)
                       *, gated, reassociate):
    """grid = (dst_tiles [parallel], relations [arbitrary / reduction])."""
    del fi_ref, fr_ref  # only consumed inside the A index_map
    i = pl.program_id(0)
    r = pl.program_id(1)

    @pl.when(r == 0)
    def _():
        o_ref[...] = jnp.zeros_like(o_ref)

    # Skip compute for all-zero adjacency blocks (their DMA is also skipped:
    # the A index_map repeats the previously fetched block index).
    @pl.when(nz_ref[i, r] != 0)
    def _():
        h = h_ref[...]                                           # (N, F)  f32, resident
        if gated:
            # gate = sigmoid(H @ gate_W[r]) without an (F,1) MXU pass:
            # VPU multiply + XLU reduce + EUP sigmoid.
            gate = jax.nn.sigmoid(
                jnp.sum(h * gw_ref[...], axis=-1, keepdims=True))  # (N, 1) f32
            hg = h * gate
        else:
            hg = h
        a = a_ref[...]                                           # (TM, N)  bf16
        w = w_ref[...]                                           # (F, 256) bf16
        if reassociate:
            # (A @ (gate*H)) @ W  -> N*N*F + N*F*256 FLOPs (wins when F < 256)
            t = jnp.dot(a, hg.astype(jnp.bfloat16),
                        preferred_element_type=jnp.float32)       # (TM, F)
            contrib = jnp.dot(t.astype(jnp.bfloat16), w,
                              preferred_element_type=jnp.float32)  # (TM, 256)
        else:
            # A @ ((gate*H) @ W)  (kept for F >= 256)
            msg = jnp.dot(hg.astype(jnp.bfloat16), w,
                          preferred_element_type=jnp.float32)      # (N, 256)
            contrib = jnp.dot(a, msg.astype(jnp.bfloat16),
                              preferred_element_type=jnp.float32)  # (TM, 256)
        o_ref[...] += contrib

    @pl.when(r == pl.num_programs(1) - 1)
    def _():
        # apply_func: relu activation
        o_ref[...] = jnp.maximum(o_ref[...], 0.0)


# ------------------------------- wrapper ------------------------------------ #
def rgcn_layer(h, weight, gate_weight, adj, *, gated=True, tm=256):
    """One RGCNLayer forward.

    h:(N,F) f32, weight:(R,F,256), gate_weight:(R,F,1) (or None when not gated),
    adj:(R,N,N) with adj[r,dst,src] = edge norm.  Returns (N,256) f32.
    """
    N, F = h.shape
    R = weight.shape[0]
    assert weight.shape == (R, F, OUT_DIM)
    assert adj.shape == (R, N, N)
    assert tm % 8 == 0, "dst tile must be a multiple of 8 sublanes"
    if gated:
        assert gate_weight is not None

    # Lane-dense padding: F -> multiple of 128; N -> multiple of (128, tm).
    f_pad = _round_up(F, 128)
    tm = min(tm, _round_up(N, 128))
    n_pad = _round_up(_round_up(N, 128), tm)
    num_tiles = n_pad // tm

    # --- pad / lay out operands --------------------------------------------- #
    hp = jnp.zeros((n_pad, f_pad), jnp.float32).at[:N, :F].set(
        h.astype(jnp.float32))                                       # resident, f32
    wp = jnp.zeros((R, f_pad, OUT_DIM), jnp.float32).at[:, :F, :].set(
        weight.astype(jnp.float32)).astype(jnp.bfloat16)             # MXU rhs, bf16
    if gated:
        gw_t = jnp.zeros((R, 1, f_pad), jnp.float32).at[:, 0, :F].set(
            gate_weight[:, :, 0].astype(jnp.float32))                # lane-major gate row
    else:
        gw_t = jnp.zeros((R, 1, f_pad), jnp.float32)
    ap_f32 = jnp.zeros((R, n_pad, n_pad), jnp.float32).at[:, :N, :N].set(
        adj.astype(jnp.float32))

    # --- per-(dst-tile, relation) sparsity metadata (scalar prefetch) -------- #
    blocks = ap_f32.reshape(R, num_tiles, tm, n_pad)
    nz = jnp.any(blocks != 0.0, axis=(2, 3)).T.astype(jnp.int32)      # (T, R)
    flat = nz.reshape(-1)                                             # grid order: i outer, r inner
    step_ids = jnp.arange(flat.shape[0], dtype=jnp.int32)
    last_nonempty = jnp.maximum(
        jax.lax.cummax(jnp.where(flat > 0, step_ids, jnp.int32(-1))), 0)
    fetch_i = (last_nonempty // R).astype(jnp.int32).reshape(num_tiles, R)
    fetch_r = (last_nonempty % R).astype(jnp.int32).reshape(num_tiles, R)

    ap = ap_f32.astype(jnp.bfloat16)          # dominant DMA stream in bf16

    reassociate = f_pad < OUT_DIM
    kernel = functools.partial(_rgcn_layer_kernel,
                               gated=gated, reassociate=reassociate)

    # --- cost / VMEM hints ---------------------------------------------------- #
    if reassociate:
        flops = 2 * R * (n_pad * n_pad * f_pad + n_pad * f_pad * OUT_DIM)
    else:
        flops = 2 * R * (num_tiles * n_pad * f_pad * OUT_DIM + n_pad * n_pad * OUT_DIM)
    transcendentals = R * num_tiles * n_pad if gated else 0
    bytes_accessed = int(ap.size * 2 + hp.size * 4 + wp.size * 2
                         + gw_t.size * 4 + n_pad * OUT_DIM * 4)
    vmem_bytes = (hp.size * 4                      # resident H (f32)
                  + 2 * tm * n_pad * 2             # double-buffered A tile (bf16)
                  + 2 * f_pad * OUT_DIM * 2        # double-buffered W[r] (bf16)
                  + 2 * f_pad * 4                  # gate row (f32)
                  + 2 * tm * OUT_DIM * 4)          # output accumulator tile (f32)
    vmem_limit = int(min(max(2 * vmem_bytes, 16 * 2 ** 20), 48 * 2 ** 20))

    out = pl.pallas_call(
        kernel,
        out_shape=jax.ShapeDtypeStruct((n_pad, OUT_DIM), jnp.float32),
        grid_spec=pltpu.PrefetchScalarGridSpec(
            num_scalar_prefetch=3,
            grid=(num_tiles, R),
            in_specs=[
                # H: resident across the whole grid.
                pl.BlockSpec((n_pad, f_pad), lambda i, r, nz, fi, fr: (0, 0)),
                # W[r]
                pl.BlockSpec((pl.Squeezed(), f_pad, OUT_DIM),
                             lambda i, r, nz, fi, fr: (r, 0, 0)),
                # gate_W[r] stored as a lane-major (1, F) row
                pl.BlockSpec((pl.Squeezed(), 1, f_pad),
                             lambda i, r, nz, fi, fr: (r, 0, 0)),
                # A[r, dst_tile, :]; empty blocks repeat the previous non-empty
                # block index so the pipeline skips their DMA.
                pl.BlockSpec((pl.Squeezed(), tm, n_pad),
                             lambda i, r, nz, fi, fr: (fr[i, r], fi[i, r], 0)),
            ],
            out_specs=pl.BlockSpec((tm, OUT_DIM), lambda i, r, nz, fi, fr: (i, 0)),
        ),
        compiler_params=pltpu.CompilerParams(
            dimension_semantics=("parallel", "arbitrary"),
            vmem_limit_bytes=vmem_limit),
        cost_estimate=pl.CostEstimate(flops=int(flops),
                                      transcendentals=int(transcendentals),
                                      bytes_accessed=bytes_accessed),
    )(nz, fetch_i, fetch_r, hp, wp, gw_t, ap)
    return out[:N]


# ------------------------------ model glue ---------------------------------- #
def xavier_uniform(key, shape, gain):
    # torch.nn.init.xavier_uniform_ fan computation for a 3D tensor (R, F, C):
    receptive = 1
    for d in shape[2:]:
        receptive *= d
    fan_in = shape[1] * receptive
    fan_out = shape[0] * receptive
    bound = gain * (6.0 / (fan_in + fan_out)) ** 0.5
    return jax.random.uniform(key, shape, jnp.float32, -bound, bound)


def init_rgcn_model(key, h_dim, num_rels, num_hidden_layers=1):
    gain_relu = 2.0 ** 0.5      # calculate_gain('relu')
    gain_sigm = 1.0             # calculate_gain('sigmoid')
    params = []
    for _ in range(num_hidden_layers):
        key, kw, kg = jax.random.split(key, 3)
        w = xavier_uniform(kw, (num_rels, h_dim, OUT_DIM), gain_relu)
        gw = xavier_uniform(kg, (num_rels, h_dim, 1), gain_sigm)
        params.append((w, gw))
    return params


def rgcn_model_forward(h, adj, params, graph_sizes, *, gated=True, tm=256):
    for (w, gw) in params:
        h = rgcn_layer(h, w, gw, adj, gated=gated, tm=tm)
    # dgl.unbatch equivalent: split node features per sub-graph (host side).
    outs, off = [], 0
    for n in graph_sizes:
        outs.append(h[off:off + n])
        off += n
    return outs


# ------------------------------ references ----------------------------------- #
def _reference_layer_f32(h, w, gw, adj, gated=True):
    """Exact f32 formulation of the original module."""
    hi = jax.lax.Precision.HIGHEST
    msg = jnp.einsum('nf,rfc->rnc', h, w, precision=hi)
    if gated:
        gate = jax.nn.sigmoid(jnp.einsum('nf,rfo->rno', h, gw, precision=hi))
        msg = msg * gate
    agg = jnp.einsum('rvn,rnc->vc', adj, msg, precision=hi)
    return jnp.maximum(agg, 0.0)


def _reference_layer_mixed(h, w, gw, adj, gated=True):
    """Mimics the kernel's reassociated, bf16-fed-MXU / f32-accumulate math."""
    hi = jax.lax.Precision.HIGHEST
    af = adj.astype(jnp.bfloat16).astype(jnp.float32)
    wf = w.astype(jnp.bfloat16).astype(jnp.float32)
    if gated:
        gate = jax.nn.sigmoid(
            jnp.einsum('nf,rf->rn', h, gw[:, :, 0], precision=hi))[..., None]
        hg = h[None] * gate
    else:
        hg = jnp.broadcast_to(h[None], (adj.shape[0],) + h.shape)
    hg = hg.astype(jnp.bfloat16).astype(jnp.float32)
    t = jnp.einsum('rvn,rnf->rvf', af, hg, precision=hi)
    t = t.astype(jnp.bfloat16).astype(jnp.float32)
    out = jnp.einsum('rvf,rfc->vc', t, wf, precision=hi)
    return jnp.maximum(out, 0.0)


# --------------------------------- main -------------------------------------- #
if __name__ == "__main__":
    N_NODES = 40          # total nodes in the batched graph
    H_DIM = 32            # feat_size
    NUM_RELS = 3
    NUM_EDGES = 120
    GRAPH_SIZES = [16, 24]  # two sub-graphs (dgl.unbatch split)

    key = jax.random.PRNGKey(0)
    key, kh, ks, kd, kr, kn = jax.random.split(key, 6)

    # node features
    h0 = jax.random.normal(kh, (N_NODES, H_DIM), jnp.float32)

    # random deterministic edge list: (src, dst, rel_type, norm)
    src = jax.random.randint(ks, (NUM_EDGES,), 0, N_NODES)
    dst = jax.random.randint(kd, (NUM_EDGES,), 0, N_NODES)
    rel = jax.random.randint(kr, (NUM_EDGES,), 0, NUM_RELS)
    norm = jax.random.uniform(kn, (NUM_EDGES,), jnp.float32, 0.1, 1.0)

    # dense per-relation adjacency: A[r, dst, src] += norm
    adj = jnp.zeros((NUM_RELS, N_NODES, N_NODES), jnp.float32)
    adj = adj.at[rel, dst, src].add(norm)

    # parameters (RGCNModel defaults: one hidden layer, gated path)
    params = init_rgcn_model(key, H_DIM, NUM_RELS, num_hidden_layers=1)

    # tm=64 exercises a multi-tile "parallel" dst grid (and the zero-block skip
    # on the pure-padding second tile) at these small demo shapes.
    outs = rgcn_model_forward(h0, adj, params, GRAPH_SIZES, gated=True, tm=64)
    outs = [jax.block_until_ready(o) for o in outs]
    got = jnp.concatenate(outs, axis=0)
    assert got.shape == (N_NODES, OUT_DIM)

    w0, gw0 = params[0]
    # Tight check against a reference that mimics the kernel's mixed-precision math.
    ref_mixed = _reference_layer_mixed(h0, w0, gw0, adj, gated=True)
    assert jnp.allclose(got, ref_mixed, atol=2e-3, rtol=2e-3), \
        "mismatch vs mixed-precision reference"
    # Loose (bf16-level) check against the exact f32 formulation of the module.
    ref_exact = _reference_layer_f32(h0, w0, gw0, adj, gated=True)
    rel_err = jnp.linalg.norm(got - ref_exact) / (jnp.linalg.norm(ref_exact) + 1e-12)
    assert rel_err < 1e-2, f"relative error vs f32 reference too large: {rel_err}"

    print("KERNEL_OK")
</pallas_src>

<mosaic_0001>
module attributes {stable_mosaic.version = 11 : i64} {
  func.func @_rgcn_layer_kernel(%arg0: i32, %arg1: i32, %arg2: memref<2x3xi32, #tpu.memory_space<smem>>, %arg3: memref<2x3xi32, #tpu.memory_space<smem>>, %arg4: memref<2x3xi32, #tpu.memory_space<smem>>, %arg5: memref<128x128xf32, #tpu.memory_space<vmem>>, %arg6: memref<1x128x256xbf16, #tpu.memory_space<vmem>>, %arg7: memref<1x1x128xf32, #tpu.memory_space<vmem>>, %arg8: memref<1x64x128xbf16, #tpu.memory_space<vmem>>, %arg9: memref<64x256xf32, #tpu.memory_space<vmem>>) attributes {dimension_semantics = [#tpu.dimension_semantics<parallel>, #tpu.dimension_semantics<arbitrary>], iteration_bounds = array<i64: 2, 3>, scalar_prefetch = 3 : i64, scratch_operands = 0 : i64, tpu.core_type = #tpu.core_type<tc>, window_params = [{pipeline_mode = #tpu.pipeline_mode<synchronous>, transform_indices = @transform_0, window_bounds = array<i64: 128, 128>}, {transform_indices = @transform_1, window_bounds = array<i64: 1, 128, 256>}, {transform_indices = @transform_2, window_bounds = array<i64: 1, 1, 128>}, {transform_indices = @transform_3, window_bounds = array<i64: 1, 64, 128>}, {transform_indices = @transform_4, window_bounds = array<i64: 64, 256>}]} {
    %c0_i32 = arith.constant 0 : i32
    %0 = arith.cmpi eq, %arg1, %c0_i32 : i32
    %1 = arith.extui %0 : i1 to i32
    %c0_i32_0 = arith.constant 0 : i32
    %2 = arith.cmpi ne, %1, %c0_i32_0 : i32
    scf.if %2 {
      %cst = arith.constant 0.000000e+00 : f32
      %12 = vector.broadcast %cst : f32 to vector<64x256xf32>
      %c0 = arith.constant 0 : index
      %c0_4 = arith.constant 0 : index
      %13 = vector.load %arg9[%c0, %c0_4] : memref<64x256xf32, #tpu.memory_space<vmem>>, vector<64x256xf32>
      tpu.vector_store %arg9[%c0, %c0_4], %12 {strides = array<i32>} : memref<64x256xf32, #tpu.memory_space<vmem>>, vector<64x256xf32>,
    } else {
    }
    %3 = arith.index_cast %arg0 : i32 to index
    %4 = arith.index_cast %arg1 : i32 to index
    %5 = memref.load %arg2[%3, %4] : memref<2x3xi32, #tpu.memory_space<smem>>
    %c0_i32_1 = arith.constant 0 : i32
    %6 = arith.cmpi ne, %5, %c0_i32_1 : i32
    %7 = arith.extui %6 : i1 to i32
    %c0_i32_2 = arith.constant 0 : i32
    %8 = arith.cmpi ne, %7, %c0_i32_2 : i32
    scf.if %8 {
      %c0 = arith.constant 0 : index
      %c0_4 = arith.constant 0 : index
      %12 = vector.load %arg5[%c0, %c0_4] : memref<128x128xf32, #tpu.memory_space<vmem>>, vector<128x128xf32>
      %c0_5 = arith.constant 0 : index
      %c0_6 = arith.constant 0 : index
      %c0_7 = arith.constant 0 : index
      %13 = vector.load %arg7[%c0_5, %c0_6, %c0_7] : memref<1x1x128xf32, #tpu.memory_space<vmem>>, vector<1x1x128xf32>
      %14 = vector.shape_cast %13 : vector<1x1x128xf32> to vector<1x128xf32>
      %15 = vector.broadcast %14 : vector<1x128xf32> to vector<128x128xf32>
      %16 = arith.mulf %12, %15 : vector<128x128xf32>
      %cst = arith.constant dense<0.000000e+00> : vector<128xf32>
      %17 = vector.multi_reduction <add>, %16, %cst [1] : vector<128x128xf32> to vector<128xf32>
      %18 = vector.shape_cast %17 : vector<128xf32> to vector<128x1xf32>
      %19 = arith.negf %18 : vector<128x1xf32>
      %20 = math.exp %19 : vector<128x1xf32>
      %cst_8 = arith.constant 1.000000e+00 : f32
      %21 = vector.broadcast %cst_8 : f32 to vector<128x1xf32>
      %22 = arith.addf %21, %20 : vector<128x1xf32>
      %23 = arith.divf %21, %22 : vector<128x1xf32>
      %24 = vector.broadcast %23 : vector<128x1xf32> to vector<128x128xf32>
      %25 = arith.mulf %12, %24 : vector<128x128xf32>
      %c0_9 = arith.constant 0 : index
      %c0_10 = arith.constant 0 : index
      %c0_11 = arith.constant 0 : index
      %26 = vector.load %arg8[%c0_9, %c0_10, %c0_11] : memref<1x64x128xbf16, #tpu.memory_space<vmem>>, vector<1x64x128xbf16>
      %27 = vector.shape_cast %26 : vector<1x64x128xbf16> to vector<64x128xbf16>
      %c0_12 = arith.constant 0 : index
      %c0_13 = arith.constant 0 : index
      %c0_14 = arith.constant 0 : index
      %28 = vector.load %arg6[%c0_12, %c0_13, %c0_14] : memref<1x128x256xbf16, #tpu.memory_space<vmem>>, vector<1x128x256xbf16>
      %29 = vector.shape_cast %28 : vector<1x128x256xbf16> to vector<128x256xbf16>
      %30 = arith.truncf %25 : vector<128x128xf32> to vector<128x128xbf16>
      %cst_15 = arith.constant dense<0.000000e+00> : vector<64x128xf32>
      %31 = tpu.matmul %27, %30, %cst_15 {dimension_numbers = #tpu.dot_dimension_numbers<[1], [0], [0], [1], [0, 0, 1, 1], [], []>} : vector<64x128xbf16>, vector<128x128xbf16>, vector<64x128xf32> -> vector<64x128xf32>
      %32 = arith.truncf %31 : vector<64x128xf32> to vector<64x128xbf16>
      %cst_16 = arith.constant dense<0.000000e+00> : vector<64x256xf32>
      %33 = tpu.matmul %32, %29, %cst_16 {dimension_numbers = #tpu.dot_dimension_numbers<[1], [0], [0], [1], [0, 0, 1, 1], [], []>} : vector<64x128xbf16>, vector<128x256xbf16>, vector<64x256xf32> -> vector<64x256xf32>
      %c0_17 = arith.constant 0 : index
      %c0_18 = arith.constant 0 : index
      %34 = vector.load %arg9[%c0_17, %c0_18] : memref<64x256xf32, #tpu.memory_space<vmem>>, vector<64x256xf32>
      %35 = arith.addf %34, %33 : vector<64x256xf32>
      %c0_19 = arith.constant 0 : index
      %c0_20 = arith.constant 0 : index
      %36 = vector.load %arg9[%c0_19, %c0_20] : memref<64x256xf32, #tpu.memory_space<vmem>>, vector<64x256xf32>
      tpu.vector_store %arg9[%c0_19, %c0_20], %35 {strides = array<i32>} : memref<64x256xf32, #tpu.memory_space<vmem>>, vector<64x256xf32>,
    } else {
    }
    %c2_i32 = arith.constant 2 : i32
    %9 = arith.cmpi eq, %arg1, %c2_i32 : i32
    %10 = arith.extui %9 : i1 to i32
    %c0_i32_3 = arith.constant 0 : i32
    %11 = arith.cmpi ne, %10, %c0_i32_3 : i32
    scf.if %11 {
      %c0 = arith.constant 0 : index
      %c0_4 = arith.constant 0 : index
      %12 = vector.load %arg9[%c0, %c0_4] : memref<64x256xf32, #tpu.memory_space<vmem>>, vector<64x256xf32>
      %cst = arith.constant 0.000000e+00 : f32
      %13 = vector.broadcast %cst : f32 to vector<64x256xf32>
      %14 = arith.maximumf %12, %13 : vector<64x256xf32>
      %c0_5 = arith.constant 0 : index
      %c0_6 = arith.constant 0 : index
      %15 = vector.load %arg9[%c0_5, %c0_6] : memref<64x256xf32, #tpu.memory_space<vmem>>, vector<64x256xf32>
      tpu.vector_store %arg9[%c0_5, %c0_6], %14 {strides = array<i32>} : memref<64x256xf32, #tpu.memory_space<vmem>>, vector<64x256xf32>,
    } else {
    }
    return
  }
  func.func @transform_0(%arg0: i32, %arg1: i32, %arg2: memref<2x3xi32, #tpu.memory_space<smem>>, %arg3: memref<2x3xi32, #tpu.memory_space<smem>>, %arg4: memref<2x3xi32, #tpu.memory_space<smem>>) -> (i32, i32) {
    %c0_i32 = arith.constant 0 : i32
    %c0_i32_0 = arith.constant 0 : i32
    %c0_i32_1 = arith.constant 0 : i32
    return %c0_i32, %c0_i32_0 : i32, i32
  }
  func.func @transform_1(%arg0: i32, %arg1: i32, %arg2: memref<2x3xi32, #tpu.memory_space<smem>>, %arg3: memref<2x3xi32, #tpu.memory_space<smem>>, %arg4: memref<2x3xi32, #tpu.memory_space<smem>>) -> (i32, i32, i32) {
    %c0_i32 = arith.constant 0 : i32
    %c0_i32_0 = arith.constant 0 : i32
    %c0_i32_1 = arith.constant 0 : i32
    return %arg1, %c0_i32, %c0_i32_0 : i32, i32, i32
  }
  func.func @transform_2(%arg0: i32, %arg1: i32, %arg2: memref<2x3xi32, #tpu.memory_space<smem>>, %arg3: memref<2x3xi32, #tpu.memory_space<smem>>, %arg4: memref<2x3xi32, #tpu.memory_space<smem>>) -> (i32, i32, i32) {
    %c0_i32 = arith.constant 0 : i32
    %c0_i32_0 = arith.constant 0 : i32
    %c0_i32_1 = arith.constant 0 : i32
    return %arg1, %c0_i32, %c0_i32_0 : i32, i32, i32
  }
  func.func @transform_3(%arg0: i32, %arg1: i32, %arg2: memref<2x3xi32, #tpu.memory_space<smem>>, %arg3: memref<2x3xi32, #tpu.memory_space<smem>>, %arg4: memref<2x3xi32, #tpu.memory_space<smem>>) -> (i32, i32, i32) {
    %0 = arith.index_cast %arg0 : i32 to index
    %1 = arith.index_cast %arg1 : i32 to index
    %2 = memref.load %arg4[%0, %1] : memref<2x3xi32, #tpu.memory_space<smem>>
    %3 = arith.index_cast %arg0 : i32 to index
    %4 = arith.index_cast %arg1 : i32 to index
    %5 = memref.load %arg3[%3, %4] : memref<2x3xi32, #tpu.memory_space<smem>>
    %c0_i32 = arith.constant 0 : i32
    %c0_i32_0 = arith.constant 0 : i32
    return %2, %5, %c0_i32 : i32, i32, i32
  }
  func.func @transform_4(%arg0: i32, %arg1: i32, %arg2: memref<2x3xi32, #tpu.memory_space<smem>>, %arg3: memref<2x3xi32, #tpu.memory_space<smem>>, %arg4: memref<2x3xi32, #tpu.memory_space<smem>>) -> (i32, i32) {
    %c0_i32 = arith.constant 0 : i32
    %c0_i32_0 = arith.constant 0 : i32
    return %arg0, %c0_i32 : i32, i32
  }
}

</mosaic_0001>

<bundles_post_ra>
// kernel: tpu_custom_call.1
= control target key start
LH: loop header
LB: loop body
LE: loop exit
PB: predicated region body
PF: predicated region fallthrough
CT: control target
= control target key end

     0   :  { %s2416_s0 = inlined_call_operand.hbm [shape: s32[2,3], index: 0, kind: input, shape index: {}]   ;;  %s2417_s3 = inlined_call_operand.hbm [shape: f32[128,128], index: 3, kind: input, shape index: {}]   ;;  %s2418_s4 = inlined_call_operand.hbm [shape: bf16[3,128,256], index: 4, kind: input, shape index: {}]   ;;  %s2419_s5 = inlined_call_operand.vmem [shape: f32[3,1,128], index: 5, kind: input, shape index: {}]   ;;  %s2420_s6 = inlined_call_operand.hbm [shape: bf16[3,128,128], index: 6, kind: input, shape index: {}]   ;;  %s2421_s7 = inlined_call_operand.hbm [shape: f32[128,256], index: 7, kind: output, shape index: {}]   ;;  %s2422_s1 = inlined_call_operand.vmem [shape: s32[2,3], index: 1, kind: input, shape index: {}]   ;;  %s2423_s2 = inlined_call_operand.vmem [shape: s32[2,3], index: 2, kind: input, shape index: {}]  }
   0x1   :  { %2442 = sst [smem:[#allocation33_spill]] %s2417_s3  ;;  %s1447_s26 = scalar_lea.hbm %s2416_s0, 32 }
   0x2   :  { %2443 = sst [smem:[#allocation34_spill]] %s2418_s4  ;;  %p1448_p0 = scmp.ne.s32.totalorder %s2416_s0, %s1447_s26 }
   0x3   :  { %2444 = sst [smem:[#allocation35_spill]] %s2419_s5  ;;  %p1451_p1 = scmp.lt.u32.totalorder %s1447_s26, %s2416_s0 }
   0x4   :  { %2445 = sst [smem:[#allocation36_spill]] %s2421_s7 }
   0x5   :  { %p1453_p2 = pnand %p1451_p1, %p1448_p0 }
   0x7   :  { %1456 = shalt.err (!%p1453_p2)  }
   0x8   :  { %s1727_s8 = smov [#allocation3]   ;;  %s14_s13 = sshll.u32 %s2422_s1, 4  ;;  %s15_s13 = int_to_ptr.vmem [resolvable:$true] %s14_s13 }
   0x9   :  { %13 = dma.hbm_to_smem %s2416_s0, 32, %s1727_s8, [#allocation2] }
   0xa   :  { %s18_s16 = sshll.u32 %s2423_s2, 4  ;;  %s1457_s17 = scalar_lea.vmem %s15_s13, 32  ;;  %s19_s16 = int_to_ptr.vmem [resolvable:$true] %s18_s16 }
   0xb   :  { %p1458_p3 = scmp.ne.s32.totalorder %s15_s13, %s1457_s17  ;;  %p1462_p4 = scmp.lt.s32.totalorder %s15_s13, %s15_s13 }
   0xc   :  { %p1463_p5 = scmp.lt.s32.totalorder %s1457_s17, %s1457_s17 }
   0xe   :  { %p1464_p6 = por %p1463_p5, %p1462_p4 }
  0x10   :  { %p1465_p7 = pnand %p1464_p6, %p1458_p3 }
  0x12   :  { %1468 = shalt.err (!%p1465_p7)  }
  0x13   :  { %s1728_s18 = smov [#allocation4]   ;;  %s1469_s0 = scalar_lea.vmem %s19_s16, 32 }
  0x14   :  { %17 = dma.vmem_to_smem %s15_s13, 32, %s1728_s18, [#allocation2] }
  0x15   :  { %p1470_p8 = scmp.ne.s32.totalorder %s19_s16, %s1469_s0  ;;  %p1474_p9 = scmp.lt.s32.totalorder %s19_s16, %s19_s16 }
  0x16   :  { %p1475_p10 = scmp.lt.s32.totalorder %s1469_s0, %s1469_s0 }
  0x18   :  { %p1476_p11 = por %p1475_p10, %p1474_p9 }
  0x1a   :  { %p1477_p12 = pnand %p1476_p11, %p1470_p8 }
  0x1c   :  { %1480 = shalt.err (!%p1477_p12)  }
  0x1d   :  { %s1729_s1 = smov [#allocation5]  }
  0x1e   :  { %21 = dma.vmem_to_smem %s19_s16, 32, %s1729_s1, [#allocation2] }
  0x1f   :  { %1653 = dma.done.wait [#allocation2], 96 }
  0x20   :  { %1654 = vsyncadd [#allocation2], 4294967200 }
  0x21   :  { %23 = sfence }
  0x22   :  { %24 = vsyncpa [#allocation7], 0 }
  0x23   :  { %25 = vsyncpa [#allocation10], 0 }
  0x24   :  { %27 = vsyncpa [#allocation10 + $0x1], 0 }
  0x25   :  { %28 = vsyncpa [#allocation8], 0 }
  0x26   :  { %30 = vsyncpa [#allocation8 + $0x1], 0  ;;  %s1800_s2 = smov 0   ;;  %s1802_s19 = smov 0  }
  0x27   :  { %s1804_s20 = smov 0   ;;  %s1806_s21 = smov 0  }
  0x28   :  { %s1808_s22 = smov 0   ;;  %s1810_s23 = smov 0  }
  0x29   :  { %s1812_s24 = smov 0   ;;  %s1814_s25 = smov 0  }
  0x2a   :  { %s1816_s26 = smov 0   ;;  %s1818_s27 = smov 0  }
  0x2b   :  { %s1820_s28 = smov 0   ;;  %s1822_s29 = smov 0  }
  0x2c   :  { %s1824_s30 = smov 0   ;;  %s1826_s8 = smov 0  }
  0x2d LB: > { %2446 = sst [smem:[#allocation22_spill]] %s1681_s20  ;;  %s45_s9 = sadd.s32 1, %s1717_s29  ;;  %s1725_s8 = sphi %s1826_s8, %s36_s8   ;;  %s1721_s30 = sphi %s1824_s30, %s2505_s30   ;;  %s1717_s29 = sphi %s1822_s29, %s2504_s29   ;;  %s1713_s28 = sphi %s1820_s28, %s2503_s28   ;;  %s1709_s27 = sphi %s1818_s27, %s2513_s27   ;;  %s1705_s26 = sphi %s1816_s26, %s2501_s26   ;;  %s1701_s25 = sphi %s1814_s25, %s2512_s25   ;;  %s1697_s24 = sphi %s1812_s24, %s2511_s24   ;;  %s1693_s23 = sphi %s1810_s23, %s2510_s23   ;;  %s1689_s22 = sphi %s1808_s22, %s2509_s22   ;;  %s1685_s21 = sphi %s1806_s21, %s2508_s21   ;;  %s1681_s20 = sphi %s1804_s20, %s2498_s20   ;;  %s1677_s19 = sphi %s1802_s19, %s2507_s19   ;;  %s1673_s2 = sphi %s1800_s2, %s2506_s2  }
  0x2e   : > { %2447 = sst [smem:[#allocation23_spill]] %s1705_s26  ;;  %s76_s10 = sadd.s32 1, %s1705_s26 }
  0x2f   : > { %2448 = sst [smem:[#allocation24_spill]] %s1709_s27  ;;  %p1872_p13 = scmp.ge.s32.totalorder %s45_s9, 3 }
  0x30   : > { %2449 = sst [smem:[#allocation25_spill]] %s1713_s28  ;;  %p83_p0 = scmp.ne.s32.totalorder %s1705_s26, %s1701_s25 }
  0x31   : > { %2450 = sst [smem:[#allocation26_spill]] %s1717_s29  ;;  %p2428_p1 = scmp.eq.s32.totalorder %s1725_s8, 0 }
  0x32   : > { %2451 = sst [smem:[#allocation27_spill]] %s1721_s30  ;;  %s2515_s9 = smov (%p1872_p13, %s45_s9), 0 }
  0x33   : > { %2453 = sst [smem:[#allocation28_spill]] %s2515_s9  ;;  %p1886_p2 = por %p2428_p1, %p83_p0 }
  0x34   : > { %s73_s15 = ssub.s32 %s1717_s29, %s2515_s9  ;;  %p2427_p4 = scmp.lt.s32.totalorder %s1725_s8, 6 }
  0x35   : > { %p74_p3 = scmp.eq.s32.totalorder %s73_s15, 0  ;;  %s224_s0 = sand.u32 1, %s1725_s8  }
  0x36   : > { %s226_s1 = sand.u32 1, %s1705_s26   ;;  %s1155_s7 = sshll.u32 %s1717_s29, 11 }
  0x37   : > { %s1896_s18 = scalar_select %p74_p3, %s1705_s26, %s76_s10  }
  0x38   : > { %s1095_s12 = sshll.u32 %s226_s1, 7  ;;  %s2456_s4 = sld [smem:[#allocation34_spill]] }
  0x39   : > { %2455 = sst [smem:[#allocation29_spill]] %s1896_s18  ;;  %s228_s14 = scalar_lea.vmem [#allocation9], %s1095_s12 }
  0x3a   : > { %s235_s16 = sshll.u32 %s228_s14, 4  ;;  %p1913_p5 = pnand %p2427_p4, %p1886_p2  ;;  %s1907_s16 = int_to_ptr.vmem [resolvable:$true] %s235_s16 }
  0x3b   : > { %s1917_s15 = scalar_lea.sflag [#allocation10], %s224_s0 }
  0x3c   : > { %p1483_p7 = pneg %p1913_p5 }
  0x3e   : > { %s1905_s27 = scalar_lea.hbm %s2456_s4, %s1155_s7  ;;  %s1486_s12 = scalar_lea.hbm %s2456_s4, 6144 }
  0x3f   : > { %s1481_s5 = scalar_lea.hbm %s1905_s27, 2048  ;;  %p1487_p10 = scmp.lt.u32.totalorder %s1905_s27, %s2456_s4 }
  0x40   : > { %p1482_p6 = scmp.ne.s32.totalorder %s1905_s27, %s1481_s5  ;;  %p1488_p11 = scmp.lt.u32.totalorder %s1486_s12, %s1481_s5 }
  0x41   : > { %p1490_p0 = scmp.lt.u32.totalorder %s1481_s5, %s1905_s27 }
  0x42   : > { %p1484_p8 = pnand %p1483_p7, %p1482_p6  ;;  %p1489_p12 = por %p1488_p11, %p1487_p10 }
  0x44   : > { %p1485_p9 = pneg %p1484_p8  ;;  %p1491_p2 = por %p1490_p0, %p1489_p12 }
  0x46   : > { %p1492_p3 = pnand %p1491_p2, %p1485_p9 }
  0x48   : > { %1495 = shalt.err (!%p1492_p3)
}
  0x49   : > { %s1496_s0 = scalar_lea.vmem %s1907_s16, 2048  ;;  %s1730_s1 = smov [#allocation9]  }
  0x4a   : > { %p1497_p6 = scmp.ne.s32.totalorder %s1907_s16, %s1496_s0  ;;  %s1501_s7 = sshll.u32 %s1730_s1, 4  ;;  %s1502_s7 = int_to_ptr.vmem [resolvable:$false] %s1501_s7 }
  0x4b   : > { %s1503_s28 = scalar_lea.vmem %s1502_s7, 4096  ;;  %p1504_p1 = scmp.lt.s32.totalorder %s1907_s16, %s1502_s7 }
  0x4c   : > { %p1499_p8 = pnand %p1497_p6, %p1483_p7  ;;  %p1505_p10 = scmp.lt.s32.totalorder %s1503_s28, %s1496_s0 }
  0x4e   : > { %p1500_p4 = pneg %p1499_p8  ;;  %p1506_p11 = por %p1505_p10, %p1504_p1 }
  0x50   : > { %p1507_p12 = pnand %p1506_p11, %p1500_p4 }
  0x52   : > { %1510 = shalt.err (!%p1507_p12)
}
  0x53   : > { %s2429_s5 = smov 128   ;;  %s2430_s12 = smov 8  }
  0x54   : > { %1215 = dma.hbm_to_vmem [thread:$0]  (!%p1913_p5), %s1905_s27, 2048, %s1907_s16, %s1917_s15, %s2429_s5, %s2429_s5, %s2430_s12  }
  0x55   : > { %s1949_s13 = sadd.s32 4294967295, %s1725_s8   ;;  %s1089_s14 = sadd.s32 4294967294, %s1725_s8  }
  0x56   : > { %s48_s0 = sadd.s32 1, %s1721_s30  ;;  %p89_p1 = scmp.ne.s32.totalorder %s1701_s25, %s1697_s24 }
  0x57   : > { %s2517_s0 = smov (!%p1872_p13, %s48_s0), %s1721_s30  ;;  %p2435_p4 = scmp.eq.s32.totalorder %s1949_s13, 0 }
  0x58   : > { %p50_p7 = scmp.ge.s32.totalorder %s2517_s0, 2  ;;  %p161_p9 = scmp.ne.s32.totalorder %s1689_s22, %s1685_s21 }
  0x59   : > { %p1963_p5 = por %p2435_p4, %p89_p1  ;;  %s174_s16 = sadd.s32 1, %s1681_s20 }
  0x5a   : > { %s2519_s0 = smov (%p50_p7, %s2517_s0), 0  ;;  %p1972_p0 = por %p161_p9, %p2435_p4 }
  0x5b   : > { %s2458_s27 = scalar_select %p1963_p5, 1, 0 }
  0x5c   : > { %2459 = sst [smem:[#allocation30_spill]] %s2519_s0  ;;  %p184_p13 = scmp.ne.s32.totalorder %s1681_s20, %s1677_s19 }
  0x5d   : > { %s2460_s11 = scalar_select %p1972_p0, 1, 0 }
  0x5e   : > { %s171_s24 = ssub.s32 %s1721_s30, %s2519_s0  ;;  %p185_p2 = scmp.eq.s32.totalorder %s1949_s13, 5 }
  0x5f   : > { %p172_p3 = scmp.eq.s32.totalorder %s171_s24, 0  ;;  %p190_p6 = scmp.ne.s32.totalorder %s1677_s19, %s1673_s2 }
  0x60   : > { %p1983_p8 = por %p185_p2, %p184_p13  ;;  %p191_p10 = scmp.eq.s32.totalorder %s1089_s14, 5 }
  0x61   : > { %s1988_s10 = scalar_select %p172_p3, %s1681_s20, %s174_s16  }
  0x62   : > { %s2461_s21 = scalar_select %p1983_p8, 1, 0 }
  0x63   : > { %2462 = sst [smem:[#allocation31_spill]] %s1988_s10  ;;  %p1990_p11 = por %p191_p10, %p190_p6 }
  0x64   : > { %p1092_p12 = scmp.ge.s32.totalorder %s1725_s8, 1  ;;  %p198_p1 = scmp.lt.s32.totalorder %s1725_s8, 7 }
  0x65   : > { %s2463_s1 = scalar_select %p1990_p11, 1, 0 }
  0x66   : > { %p1996_p7 = pnand %p1092_p12, %p198_p1  ;;  %s1733_s28 = smov [#allocation6]  }
  0x67   : > { %s210_s24 = sshll.u32 %s1733_s28, 4  ;;  %s2465_s14 = sshra.s32 %s1717_s29, 7  ;;  %s2000_s24 = int_to_ptr.vmem [resolvable:$true] %s210_s24 }
  0x68   : > { %s2464_s7 = scalar_select %p1996_p7, 1, 0 }
  0x69   : > { %p1208_p9 = pneg %p1996_p7  ;;  %s127_s16 = sadd.s32 %s1721_s30, %s2465_s14 }
  0x6a   : > { %s1090_s17 = sshll.u32 %s127_s16, 7  ;;  %s2466_s5 = sshra.s32 %s2515_s9, 7 }
  0x6b   : > { %s136_s12 = sadd.s32 %s2466_s5, %s2519_s0  ;;  %p2012_p13 = pnand %p1208_p9, %p2435_p4 }
  0x6c   : > { %s2468_s18 = sand.u32 127, %s1717_s29  ;;  %s1091_s20 = sshll.u32 %s136_s12, 7 }
  0x6d   : > { %s2018_s26 = sadd.s32 %s1090_s17, %s2468_s18  ;;  %s2469_s3 = sld [smem:[#allocation33_spill]] }
  0x6e   : > { %s2021_s28 = sld [smem:[#allocation5 + %s2018_s26]]  ;;  %p1513_p3 = pneg %p2012_p13 }
  0x6f   : > { %s2024_s10 = sld [smem:[#allocation4 + %s2018_s26]] }
  0x73   : > { %s1511_s5 = scalar_lea.hbm %s2469_s3, 2048 }
  0x74   : > { %p1512_p2 = scmp.ne.s32.totalorder %s2469_s3, %s1511_s5  ;;  %p1518_p12 = scmp.lt.u32.totalorder %s1511_s5, %s2469_s3 }
  0x76   : > { %p1514_p6 = pnand %p1513_p3, %p1512_p2 }
  0x78   : > { %p1515_p10 = pneg %p1514_p6 }
  0x7a   : > { %p1520_p1 = pnand %p1518_p12, %p1515_p10 }
  0x7c   : > { %1523 = shalt.err (!%p1520_p1)
}
  0x7d   : > { %s1524_s12 = scalar_lea.vmem %s2000_s24, 2048  ;;  %p1532_p8 = scmp.lt.s32.totalorder %s2000_s24, %s2000_s24 }
  0x7e   : > { %p1525_p9 = scmp.ne.s32.totalorder %s2000_s24, %s1524_s12  ;;  %p1533_p0 = scmp.lt.s32.totalorder %s1524_s12, %s1524_s12 }
  0x80   : > { %p1527_p4 = pnand %p1525_p9, %p1513_p3  ;;  %p1534_p5 = por %p1533_p0, %p1532_p8 }
  0x82   : > { %p1528_p11 = pneg %p1527_p4 }
  0x84   : > { %p1535_p7 = pnand %p1534_p5, %p1528_p11 }
  0x86   : > { %1538 = shalt.err (!%p1535_p7)
}
  0x87   : > { %s2470_s30 = smov 8   ;;  %s2471_s0 = smov 128  }
  0x88   : > { %1211 = dma.hbm_to_vmem [thread:$0]  (!%p2012_p13), %s2469_s3, 2048, %s2000_s24, [#allocation7], %s2471_s0, %s2471_s0, %s2470_s30  }
  0x89   : > { %s2472_s5 = sand.u32 127, %s2515_s9  ;;  %p155_p4 = scmp.ne.s32.totalorder %s1693_s23, %s1689_s22 }
  0x8a   : > { %s140_s4 = sadd.s32 %s1091_s20, %s2472_s5  ;;  %p2473_p5 = scmp.eq.s32.totalorder %s1725_s8, 0 }
  0x8b   : > { %s141_s17 = sld [smem:[#allocation5 + %s140_s4]]  ;;  %s148_s14 = sadd.s32 1, %s1693_s23 }
  0x8c   : > { %s142_s18 = sld [smem:[#allocation4 + %s140_s4]]  ;;  %p2056_p0 = por %p155_p4, %p2473_p5 }
  0x8d   : > { %s253_s24 = sand.u32 1, %s1693_s23   ;;  %p2475_p11 = scmp.lt.s32.totalorder %s1725_s8, 6 }
  0x8e   : > { %s1197_s30 = scalar_select %p2056_p0, [#allocation5], [#allocation13] }
  0x8f   : > { %s1098_s5 = sshll.u32 %s253_s24, 5  ;;  %p2070_p7 = pnand %p2475_p11, %p2056_p0 }
  0x90   : > { %s2521_s26 = smov (!%p2056_p0, %s2018_s26), 0  ;;  %p2478_p13 = pmov %p2475_p11 }
  0x91   : > { %s143_s20 = ssub.s32 %s2021_s28, %s141_s17  ;;  %p2479_p2 = pmov %p2475_p11 }
  0x92   : > { %s144_s0 = ssub.s32 %s2024_s10, %s142_s18  ;;  %s2523_s30 = smov (!%p2478_p13, %s1197_s30), [#allocation15] }
  0x93   : > { %s145_s16 = sor.u32 %s144_s0, %s143_s20  ;;  %s2525_s26 = smov (!%p2479_p2, %s2521_s26), 0 }
  0x94   : > { %p146_p8 = scmp.eq.s32.totalorder %s145_s16, 0  ;;  %s263_s28 = sld [smem:[%s2523_s30 + %s2525_s26]] }
  0x95   : > { %s1199_s10 = scalar_select %p2056_p0, [#allocation4], [#allocation14] }
  0x96   : > { %s2078_s3 = scalar_select %p146_p8, %s1693_s23, %s148_s14  }
  0x97   : > { %p2480_p3 = pmov %p2479_p2  ;;  %s255_s24 = scalar_lea.vmem [#allocation11], %s1098_s5 }
  0x98   : > { %2477 = sst [smem:[#allocation32_spill]] %s2078_s3  ;;  %s273_s20 = sshll.u32 %s255_s24, 4  ;;  %s2088_s20 = int_to_ptr.vmem [resolvable:$true] %s273_s20 }
  0x99   : > { %s2527_s10 = smov (!%p2480_p3, %s1199_s10), [#allocation16]  ;;  %p1541_p10 = pneg %p2070_p7 }
  0x9a   : > { %s264_s17 = sld [smem:[%s2527_s10 + %s2525_s26]]  ;;  %s1101_s18 = sshll.u32 %s263_s28, 4 }
  0x9b   : > { %s1544_s5 = scalar_lea.hbm %s2420_s6, 3072 }
  0xa0   : > { %s1100_s0 = sshll.u32 %s264_s17, 3 }
  0xa1   : > { %s270_s16 = sadd.s32 %s1101_s18, %s1100_s0 }
  0xa2   : > { %s1102_s14 = sshll.u32 %s270_s16, 6 }
  0xa3   : > { %s2093_s3 = scalar_lea.hbm %s2420_s6, %s1102_s14 }
  0xa4   : > { %s1539_s12 = scalar_lea.hbm %s2093_s3, 512  ;;  %p1545_p9 = scmp.lt.u32.totalorder %s2093_s3, %s2420_s6 }
  0xa5   : > { %p1540_p6 = scmp.ne.s32.totalorder %s2093_s3, %s1539_s12  ;;  %p1546_p4 = scmp.lt.u32.totalorder %s1544_s5, %s1539_s12 }
  0xa6   : > { %p1548_p0 = scmp.lt.u32.totalorder %s1539_s12, %s2093_s3 }
  0xa7   : > { %p1542_p12 = pnand %p1541_p10, %p1540_p6  ;;  %p1547_p5 = por %p1546_p4, %p1545_p9 }
  0xa9   : > { %p1543_p1 = pneg %p1542_p12  ;;  %p1549_p8 = por %p1548_p0, %p1547_p5 }
  0xab   : > { %p1550_p11 = pnand %p1549_p8, %p1543_p1 }
  0xad   : > { %1553 = shalt.err (!%p1550_p11)
}
  0xae   : > { %s1554_s9 = scalar_lea.vmem %s2088_s20, 512  ;;  %s1734_s28 = smov [#allocation11]  }
  0xaf   : > { %p1555_p13 = scmp.ne.s32.totalorder %s2088_s20, %s1554_s9  ;;  %s1559_s17 = sshll.u32 %s1734_s28, 4  ;;  %s1560_s17 = int_to_ptr.vmem [resolvable:$false] %s1559_s17 }
  0xb0   : > { %s1561_s18 = scalar_lea.vmem %s1560_s17, 1024  ;;  %p1562_p6 = scmp.lt.s32.totalorder %s2088_s20, %s1560_s17 }
  0xb1   : > { %p1557_p2 = pnand %p1555_p13, %p1541_p10  ;;  %p1563_p12 = scmp.lt.s32.totalorder %s1561_s18, %s1554_s9 }
  0xb3   : > { %p1558_p3 = pneg %p1557_p2  ;;  %p1564_p9 = por %p1563_p12, %p1562_p6 }
  0xb5   : > { %p1565_p4 = pnand %p1564_p9, %p1558_p3 }
  0xb7   : > { %1568 = shalt.err (!%p1565_p4)
}
  0xb8   : > { %s1735_s24 = smov 64   ;;  %s1736_s0 = smov 4  }
  0xb9   : > { %1222 = dma.hbm_to_vmem [thread:$0]  (!%p2070_p7), %s2093_s3, 512, %s2088_s20, %s1917_s15, %s1735_s24, %s1735_s24, %s1736_s0  }
  0xba   : > { %p2481_p10 = scmp.ne.s32.totalorder %s2464_s7, 0 }
  0xbb   : > { %p2482_p1 = scmp.eq.s32.totalorder (!%p2481_p10), %s1949_s13, 0 }
  0xbc   : > { %285 = sbr.rel (%p2481_p10) target bundleno = 956 (0x3bc), region = 36 }
  0xc3   : > { %1656 = dma.done.wait (%p2482_p1), [#allocation7], 2048   ;;  %p2483_p5 = pmov %p2482_p1 }
  0xc4   : > { %s291_s16 = sand.u32 1, %s1949_s13   ;;  %s293_s14 = sand.u32 1, %s1701_s25  }
  0xc5   : > { %1658 = vsyncadd (%p2483_p5), [#allocation7], 4294965248  ;;  %s1105_s12 = sshll.u32 %s293_s14, 7  ;;  %s292_s26 = scalar_lea.sflag [#allocation10], %s291_s16 }
  0xc6   : > { %s2129_s30 = scalar_lea.vmem [#allocation9], %s1105_s12  ;;  %p2484_p0 = scmp.ne.s32.totalorder %s2458_s27, 0 }
  0xc8   : > { %1660 = dma.done.wait (%p2484_p0), %s292_s26, 2048  }
  0xc9   : > { %1662 = vsyncadd (%p2484_p0), %s292_s26, 4294965248  ;;  %s302_s3 = sand.u32 1, %s1689_s22   ;;  %p2485_p7 = scmp.ne.s32.totalorder %s2460_s11, 0 }
  0xca   : > { %s1106_s15 = sshll.u32 %s302_s3, 5 }
  0xcb   : > { %s2136_s7 = scalar_lea.vmem [#allocation11], %s1106_s15 }
  0xcc   : > { %1664 = dma.done.wait (%p2485_p7), %s292_s26, 512  }
  0xcd   : > { %1666 = vsyncadd (%p2485_p7), %s292_s26, 4294966784  ;;  %s2486_s13 = sld [smem:[#allocation24_spill]]  ;;  %s334_s4 = sand.u32 1, %s1677_s19  }
  0xce   : > { %s1107_s27 = sshll.u32 %s334_s4, 7  ;;  %s2487_s29 = sld [smem:[#allocation35_spill]] }
  0xcf   : > { %s2153_s28 = scalar_lea.vmem [#allocation12], %s1107_s27 }
  0xd3   : > { %p337_p8 = scmp.lt.s32.totalorder %s2486_s13, 2  ;;  %p1108_p11 = scmp.ne.s32.totalorder %s2486_s13, 0 }
  0xd4   : > { %v1737_v0 = vmov (!%p1108_p11), 0.0  }
  0xd5   : > { %s2147_s20 = scalar_select %p337_p8, %s2486_s13, 2 }
  0xd6   : > { %355 = sbr.rel (%p1108_p11) target bundleno = 222 (0xde), region = 52  ;;  %356 = vst [vmem:[%s2153_s28] sm:$0xff] (!%p1108_p11), %v1737_v0  ;;  %357 = vst [vmem:[%s2153_s28 + $0x8] sm:$0xff] (!%p1108_p11), %v1737_v0 }
  0xd7   : > { %s339_s9 = scalar_lea.vmem %s2487_s29, %s2147_s20  ;;  %358 = vst [vmem:[%s2153_s28 + $0x10] sm:$0xff] (!%p1108_p11), %v1737_v0  ;;  %359 = vst [vmem:[%s2153_s28 + $0x18] sm:$0xff] (!%p1108_p11), %v1737_v0 }
  0xd8   : > { %360 = vst [vmem:[%s2153_s28 + $0x20] sm:$0xff] (!%p1108_p11), %v1737_v0  ;;  %361 = vst [vmem:[%s2153_s28 + $0x28] sm:$0xff] (!%p1108_p11), %v1737_v0 }
  0xd9   : > { %362 = vst [vmem:[%s2153_s28 + $0x30] sm:$0xff] (!%p1108_p11), %v1737_v0  ;;  %363 = vst [vmem:[%s2153_s28 + $0x38] sm:$0xff] (!%p1108_p11), %v1737_v0 }
  0xda   : > { %364 = vst [vmem:[%s2153_s28 + $0x40] sm:$0xff] (!%p1108_p11), %v1737_v0  ;;  %365 = vst [vmem:[%s2153_s28 + $0x48] sm:$0xff] (!%p1108_p11), %v1737_v0 }
  0xdb   : > { %366 = vst [vmem:[%s2153_s28 + $0x50] sm:$0xff] (!%p1108_p11), %v1737_v0  ;;  %367 = vst [vmem:[%s2153_s28 + $0x58] sm:$0xff] (!%p1108_p11), %v1737_v0 }
  0xdc   : > { %368 = vst [vmem:[%s2153_s28 + $0x60] sm:$0xff] (!%p1108_p11), %v1737_v0  ;;  %369 = vst [vmem:[%s2153_s28 + $0x68] sm:$0xff] (!%p1108_p11), %v1737_v0 }
  0xdd   : > { %370 = vst [vmem:[%s2153_s28 + $0x70] sm:$0xff] %v1737_v0  ;;  %371 = vst [vmem:[%s2153_s28 + $0x78] sm:$0xff] %v1737_v0 }
  0xde PF: > { %s2488_s11 = sld [smem:[#allocation24_spill]]  ;;  %s2489_s17 = sld [smem:[#allocation25_spill]] }
  0xe4   : > { %s372_s18 = sshra.s32 %s2488_s11, 7  ;;  %s377_s24 = sand.u32 127, %s2488_s11 }
  0xe5   : > { %s374_s0 = sadd.s32 %s2489_s17, %s372_s18 }
  0xe6   : > { %s1109_s16 = sshll.u32 %s374_s0, 7 }
  0xe7   : > { %s378_s14 = sadd.s32 %s1109_s16, %s377_s24 }
  0xe8   : > { %s379_s12 = sld [smem:[#allocation3 + %s378_s14]] }
  0xee   : > { %p1110_p13 = scmp.eq.s32.totalorder %s379_s12, 0 }
  0xef   : > { %v2175_v1 = vld [vmem:[#allocation6 + $0x10] sm:$0xff] (!%p1110_p13)  ;;  %v1111_v2 = vld [vmem:[%s339_s9] ss:$0 sm:$0xff] (!%p1110_p13)  ;;  %v2182_v3 = vld [vmem:[#allocation6] sm:$0xff] (!%p1110_p13) }
  0xf0   : > { %383 = sbr.rel (%p1110_p13) target bundleno = 910 (0x38e), region = 56  ;;  %v409_v4 = vmul.f32 (!%p1110_p13), %v1111_v2, %v2175_v1  ;;  %v407_v5 = vmul.f32 (!%p1110_p13), %v1111_v2, %v2182_v3  ;;  %v2186_v6 = vld [vmem:[#allocation6 + $0x18] sm:$0xff] (!%p1110_p13)  ;;  %v2188_v7 = vld [vmem:[#allocation6 + $0x8] sm:$0xff] (!%p1110_p13)  ;;  %v2194_v11 = vld [vmem:[#allocation6 + $0x20] sm:$0xff] (!%p1110_p13) }
  0xf1   : > { %v410_v8 = vmul.f32 (!%p1110_p13), %v1111_v2, %v2186_v6  ;;  %v408_v9 = vmul.f32 (!%p1110_p13), %v1111_v2, %v2188_v7  ;;  %v2192_v10 = vld [vmem:[#allocation6 + $0x28] sm:$0xff] (!%p1110_p13)  ;;  %v2196_v12 = vld [vmem:[#allocation6 + $0x38] sm:$0xff] (!%p1110_p13)  ;;  %v2198_v13 = vld [vmem:[#allocation6 + $0x30] sm:$0xff] (!%p1110_p13)  ;;  %v411_v15 = vmul.f32 (!%p1110_p13), %v1111_v2, %v2194_v11 }
  0xf2   : > { %427 = vadd.xlane.f32.xlu1 (!%p1110_p13), %v409_v4  ;;  %423 = vadd.xlane.f32.xlu0 (!%p1110_p13), %v407_v5  ;;  %v412_v14 = vmul.f32 (!%p1110_p13), %v1111_v2, %v2192_v10  ;;  %v2202_v16 = vld [vmem:[#allocation6 + $0x48] sm:$0xff] (!%p1110_p13)  ;;  %v2204_v17 = vld [vmem:[#allocation6 + $0x40] sm:$0xff] (!%p1110_p13)  ;;  %v414_v18 = vmul.f32 (!%p1110_p13), %v1111_v2, %v2196_v12  ;;  %v413_v19 = vmul.f32 (!%p1110_p13), %v1111_v2, %v2198_v13  ;;  %v2210_v22 = vld [vmem:[#allocation6 + $0x58] sm:$0xff] (!%p1110_p13) }
  0xf3   : > { %v416_v20 = vmul.f32 (!%p1110_p13), %v1111_v2, %v2202_v16  ;;  %v415_v21 = vmul.f32 (!%p1110_p13), %v1111_v2, %v2204_v17  ;;  %v2212_v23 = vld [vmem:[#allocation6 + $0x50] sm:$0xff] (!%p1110_p13)  ;;  %v418_v24 = vmul.f32 (!%p1110_p13), %v1111_v2, %v2210_v22  ;;  %v2216_v26 = vld [vmem:[#allocation6 + $0x68] sm:$0xff] (!%p1110_p13)  ;;  %v2218_v27 = vld [vmem:[#allocation6 + $0x60] sm:$0xff] (!%p1110_p13) }
  0xf4   : > { %v417_v25 = vmul.f32 (!%p1110_p13), %v1111_v2, %v2212_v23  ;;  %v420_v28 = vmul.f32 (!%p1110_p13), %v1111_v2, %v2216_v26  ;;  %v419_v29 = vmul.f32 (!%p1110_p13), %v1111_v2, %v2218_v27  ;;  %v2222_v30 = vld [vmem:[#allocation6 + $0x78] sm:$0xff] (!%p1110_p13)  ;;  %v2224_v31 = vld [vmem:[#allocation6 + $0x70] sm:$0xff] (!%p1110_p13)  ;;  %v1355_v34 = vld [vmem:[%s2136_s7] sm:$0xff] (!%p1110_p13)  }
  0xf5   : > { %v422_v32 = vmul.f32 (!%p1110_p13), %v1111_v2, %v2222_v30  ;;  %v421_v33 = vmul.f32 (!%p1110_p13), %v1111_v2, %v2224_v31  ;;  %1186 = vmatprep.mubr.bf16.mxu0 (!%p1110_p13), %v1355_v34  ;;  %v1359_v35 = vld [vmem:[%s2129_s30 + $0x4] ss:$8 sps:$4 sm:$0xff] (!%p1110_p13)   ;;  %v1361_v36 = vld [vmem:[%s2129_s30] ss:$8 sps:$4 sm:$0xff] (!%p1110_p13)   ;;  %v1362_v37 = vld [vmem:[%s2129_s30 + $0x14] ss:$8 sps:$4 sm:$0xff] (!%p1110_p13)  }
  0xf6   : > { %429 = vadd.xlane.f32.xlu1 (!%p1110_p13), %v410_v8  ;;  %425 = vadd.xlane.f32.xlu0 (!%p1110_p13), %v408_v9  ;;  %v1364_v38 = vld [vmem:[%s2129_s30 + $0x10] ss:$8 sps:$4 sm:$0xff] (!%p1110_p13)   ;;  %v1365_v39 = vld [vmem:[%s2129_s30 + $0x24] ss:$8 sps:$4 sm:$0xff] (!%p1110_p13)   ;;  %v1367_v40 = vld [vmem:[%s2129_s30 + $0x20] ss:$8 sps:$4 sm:$0xff] (!%p1110_p13)  }
  0xf7   : > { %772 = vmatprep.subr.bf16.mxu1 %v1359_v35  ;;  %v1368_v41 = vld [vmem:[%s2129_s30 + $0x34] ss:$8 sps:$4 sm:$0xff]   ;;  %v1370_v42 = vld [vmem:[%s2129_s30 + $0x30] ss:$8 sps:$4 sm:$0xff]   ;;  %v1371_v43 = vld [vmem:[%s2129_s30 + $0x44] ss:$8 sps:$4 sm:$0xff]  }
  0xf8   : > { %773 = vmatpush1.bf16.msra.mxu1 %v1361_v36  ;;  %v1373_v44 = vld [vmem:[%s2129_s30 + $0x40] ss:$8 sps:$4 sm:$0xff]   ;;  %v1374_v45 = vld [vmem:[%s2129_s30 + $0x54] ss:$8 sps:$4 sm:$0xff]   ;;  %v1376_v46 = vld [vmem:[%s2129_s30 + $0x50] ss:$8 sps:$4 sm:$0xff]  }
  0xf9   : > { %774 = vmatprep.subr.bf16.mxu1 %v1362_v37  ;;  %v1377_v47 = vld [vmem:[%s2129_s30 + $0x64] ss:$8 sps:$4 sm:$0xff]   ;;  %v1379_v48 = vld [vmem:[%s2129_s30 + $0x60] ss:$8 sps:$4 sm:$0xff]  }
  0xfa   : > { %433 = vadd.xlane.f32.xlu1 %v412_v14  ;;  %431 = vadd.xlane.f32.xlu0 %v411_v15 }
  0xfc   : > { %775 = vmatpush1.bf16.msra.mxu1 %v1364_v38 }
  0xfd   : > { %776 = vmatprep.subr.bf16.mxu1 %v1365_v39 }
  0xfe   : > { %437 = vadd.xlane.f32.xlu1 %v414_v18  ;;  %435 = vadd.xlane.f32.xlu0 %v413_v19 }
 0x100   : > { %777 = vmatpush1.bf16.msra.mxu1 %v1367_v40 }
 0x101   : > { %778 = vmatprep.subr.bf16.mxu1 %v1368_v41 }
 0x102   : > { %441 = vadd.xlane.f32.xlu1 %v416_v20  ;;  %439 = vadd.xlane.f32.xlu0 %v415_v21 }
 0x104   : > { %779 = vmatpush1.bf16.msra.mxu1 %v1370_v42 }
 0x105   : > { %780 = vmatprep.subr.bf16.mxu1 %v1371_v43 }
 0x106   : > { %445 = vadd.xlane.f32.xlu1 %v418_v24  ;;  %443 = vadd.xlane.f32.xlu0 %v417_v25 }
 0x108   : > { %781 = vmatpush1.bf16.msra.mxu1 %v1373_v44 }
 0x109   : > { %782 = vmatprep.subr.bf16.mxu1 %v1374_v45 }
 0x10a   : > { %449 = vadd.xlane.f32.xlu1 %v420_v28  ;;  %447 = vadd.xlane.f32.xlu0 %v419_v29 }
 0x10c   : > { %783 = vmatpush1.bf16.msra.mxu1 %v1376_v46 }
 0x10d   : > { %784 = vmatprep.subr.bf16.mxu1 %v1377_v47 }
 0x10e   : > { %453 = vadd.xlane.f32.xlu1 %v422_v32  ;;  %451 = vadd.xlane.f32.xlu0 %v421_v33 }
 0x110   : > { %785 = vmatpush1.bf16.msra.mxu1 %v1379_v48 }
 0x17f   : > { %v428_v49 = vpop.xlane.xlu1 %427  ;;  %v424_v50 = vpop.xlane.xlu0 %423 }
 0x180   : > { %v1114_v51 = vmul.f32 -1.442695, %v428_v49  ;;  %v1112_v52 = vmul.f32 -1.442695, %v424_v50 }
 0x182   : > { %1383 = vpow2.f32 %v1114_v51 }
 0x183   : > { %1385 = vpow2.f32 %v1112_v52  ;;  %v430_v53 = vpop.xlane.xlu1 %429  ;;  %v426_v54 = vpop.xlane.xlu0 %425 }
 0x184   : > { %v1115_v55 = vmul.f32 -1.442695, %v430_v53  ;;  %v1113_v56 = vmul.f32 -1.442695, %v426_v54 }
 0x186   : > { %1387 = vpow2.f32 %v1115_v55 }
 0x187   : > { %1389 = vpow2.f32 %v1113_v56  ;;  %v434_v57 = vpop.xlane.xlu1 %433  ;;  %v432_v58 = vpop.xlane.xlu0 %431 }
 0x188   : > { %v1117_v59 = vmul.f32 -1.442695, %v434_v57  ;;  %v1116_v60 = vmul.f32 -1.442695, %v432_v58 }
 0x18a   : > { %1391 = vpow2.f32 %v1117_v59 }
 0x18b   : > { %1393 = vpow2.f32 %v1116_v60  ;;  %v438_v61 = vpop.xlane.xlu1 %437  ;;  %v436_v62 = vpop.xlane.xlu0 %435 }
 0x18c   : > { %v1384_v63 = vpop.eup %1383  ;;  %v1119_v0 = vmul.f32 -1.442695, %v438_v61  ;;  %v1118_v5 = vmul.f32 -1.442695, %v436_v62 }
 0x18d   : > { %v1386_v2 = vpop.eup %1385  ;;  %v505_v4 = vadd.f32 1.0, %v1384_v63 }
 0x18e   : > { %v503_v8 = vadd.f32 1.0, %v1386_v2  ;;  %1395 = vpow2.f32 %v1119_v0 }
 0x18f   : > { %1397 = vrcp.f32 %v505_v4  ;;  %v442_v9 = vpop.xlane.xlu1 %441  ;;  %v440_v14 = vpop.xlane.xlu0 %439 }
 0x190   : > { %v1388_v15 = vpop.eup %1387  ;;  %1399 = vrcp.f32 %v503_v8  ;;  %v1121_v18 = vmul.f32 -1.442695, %v442_v9  ;;  %v1120_v21 = vmul.f32 -1.442695, %v440_v14 }
 0x191   : > { %v1390_v19 = vpop.eup %1389  ;;  %v506_v20 = vadd.f32 1.0, %v1388_v15  ;;  %1401 = vpow2.f32 %v1118_v5 }
 0x192   : > { %v504_v24 = vadd.f32 1.0, %v1390_v19  ;;  %1403 = vpow2.f32 %v1121_v18 }
 0x193   : > { %1405 = vrcp.f32 %v506_v20  ;;  %v446_v25 = vpop.xlane.xlu1 %445  ;;  %v444_v28 = vpop.xlane.xlu0 %443 }
 0x194   : > { %v1392_v29 = vpop.eup %1391  ;;  %1407 = vrcp.f32 %v504_v24  ;;  %v1123_v32 = vmul.f32 -1.442695, %v446_v25  ;;  %v1122_v35 = vmul.f32 -1.442695, %v444_v28 }
 0x195   : > { %v1394_v33 = vpop.eup %1393  ;;  %v508_v34 = vadd.f32 1.0, %v1392_v29  ;;  %1409 = vpow2.f32 %v1120_v21 }
 0x196   : > { %v507_v36 = vadd.f32 1.0, %v1394_v33  ;;  %1411 = vpow2.f32 %v1123_v32 }
 0x197   : > { %1413 = vrcp.f32 %v508_v34  ;;  %v450_v37 = vpop.xlane.xlu1 %449  ;;  %v448_v38 = vpop.xlane.xlu0 %447 }
 0x198   : > { %v1396_v39 = vpop.eup %1395  ;;  %1415 = vrcp.f32 %v507_v36  ;;  %v1125_v40 = vmul.f32 -1.442695, %v450_v37  ;;  %v1124_v41 = vmul.f32 -1.442695, %v448_v38 }
 0x199   : > { %v1398_v42 = vpop.eup %1397  ;;  %v510_v43 = vadd.f32 1.0, %v1396_v39  ;;  %1417 = vpow2.f32 %v1122_v35 }
 0x19a   : > { %v1400_v44 = vpop.eup %1399  ;;  %1419 = vpow2.f32 %v1125_v40  ;;  %v553_v55 = vmul.f32 %v1398_v42, %v2175_v1 }
 0x19b   : > { %v1402_v45 = vpop.eup %1401  ;;  %1421 = vrcp.f32 %v510_v43  ;;  %v454_v46 = vpop.xlane.xlu1 %453  ;;  %v551_v57 = vmul.f32 %v1400_v44, %v2182_v3  ;;  %v1356_v44 = vld [vmem:[%s2136_s7 + $0x8] sm:$0xff]  }
 0x19c   : > { %v452_v47 = vpop.xlane.xlu0 %451  ;;  %v1404_v48 = vpop.eup %1403  ;;  %v509_v49 = vadd.f32 1.0, %v1402_v45  ;;  %1423 = vpow2.f32 %v1124_v41  ;;  %v1127_v50 = vmul.f32 -1.442695, %v454_v46  ;;  %v1357_v45 = vld [vmem:[%s2136_s7 + $0x10] sm:$0xff]  }
 0x19d   : > { %v1406_v51 = vpop.eup %1405  ;;  %v512_v52 = vadd.f32 1.0, %v1404_v48  ;;  %v1126_v53 = vmul.f32 -1.442695, %v452_v47  ;;  %v1380_v46 = vld [vmem:[%s2129_s30 + $0x74] ss:$8 sps:$4 sm:$0xff]   ;;  %v1738_v48 = vmov 0  }
 0x19e   : > { %v1408_v54 = vpop.eup %1407  ;;  %1425 = vrcp.f32 %v509_v49  ;;  %v554_v59 = vmul.f32 %v1406_v51, %v2186_v6  ;;  %v1382_v47 = vld [vmem:[%s2129_s30 + $0x70] ss:$8 sps:$4 sm:$0xff]   ;;  %786 = vmatprep.subr.bf16.mxu1 %v1380_v46  ;;  %804 = vmatprep.mubr.bf16.mxu1 %v1738_v48 }
 0x19f   : > { %v1410_v56 = vpop.eup %1409  ;;  %1427 = vrcp.f32 %v512_v52  ;;  %v552_v58 = vmul.f32 %v1408_v54, %v2188_v7  ;;  %787 = vmatpush1.bf16.msra.mxu1 %v1382_v47 }
 0x1a0   : > { %v1412_v60 = vpop.eup %1411  ;;  %v511_v61 = vadd.f32 1.0, %v1410_v56  ;;  %1429 = vpow2.f32 %v1127_v50  ;;  %v592_v5 = vpack.c.bf16 %v554_v59, %v553_v55  ;;  %v845_v59 = vld [vmem:[%s2153_s28] sm:$0xff] }
 0x1a1   : > { %v1414_v62 = vpop.eup %1413  ;;  %v514_v63 = vadd.f32 1.0, %v1412_v60  ;;  %1431 = vpow2.f32 %v1126_v53  ;;  %v591_v0 = vpack.c.bf16 %v552_v58, %v551_v57  ;;  %v846_v60 = vld [vmem:[%s2153_s28 + $0x8] sm:$0xff] }
 0x1a2   : > { %v1416_v2 = vpop.eup %1415  ;;  %1433 = vrcp.f32 %v511_v61  ;;  %v556_v4 = vmul.f32 %v1414_v62, %v2192_v10  ;;  %v847_v62 = vld [vmem:[%s2153_s28 + $0x10] sm:$0xff] }
 0x1a3   : > { %v1418_v1 = vpop.eup %1417  ;;  %1435 = vrcp.f32 %v514_v63  ;;  %1170 = vmatprep.subr.bf16.mxu0 %v591_v0  ;;  %v555_v3 = vmul.f32 %v1416_v2, %v2194_v11  ;;  %v848_v2 = vld [vmem:[%s2153_s28 + $0x18] sm:$0xff] }
 0x1a4   : > { %v1420_v7 = vpop.eup %1419  ;;  %v513_v8 = vadd.f32 1.0, %v1418_v1  ;;  %1171 = vmatpush3.bf16.msra.mxu0 %v591_v0 }
 0x1a5   : > { %v1422_v6 = vpop.eup %1421  ;;  %v516_v9 = vadd.f32 1.0, %v1420_v7  ;;  %1172 = vmatprep.subr.bf16.mxu0 %v592_v5  ;;  %v593_v14 = vpack.c.bf16 %v556_v4, %v555_v3 }
 0x1a6   : > { %v1424_v15 = vpop.eup %1423  ;;  %1437 = vrcp.f32 %v513_v8  ;;  %v558_v19 = vmul.f32 %v1422_v6, %v2196_v12  ;;  %v849_v8 = vld [vmem:[%s2153_s28 + $0x20] sm:$0xff]  ;;  %v850_v6 = vld [vmem:[%s2153_s28 + $0x28] sm:$0xff] }
 0x1a7   : > { %1439 = vrcp.f32 %v516_v9  ;;  %v515_v18 = vadd.f32 1.0, %v1424_v15 }
 0x1a8   : > { %v1426_v10 = vpop.eup %1425  ;;  %1173 = vmatpush3.bf16.msra.mxu0 %v592_v5 }
 0x1a9   : > { %v1428_v20 = vpop.eup %1427  ;;  %1441 = vrcp.f32 %v515_v18  ;;  %1174 = vmatprep.subr.bf16.mxu0 %v593_v14  ;;  %v557_v11 = vmul.f32 %v1426_v10, %v2198_v13 }
 0x1aa   : > { %v1430_v21 = vpop.eup %1429  ;;  %v560_v29 = vmul.f32 %v1428_v20, %v2202_v16 }
 0x1ab   : > { %v1432_v24 = vpop.eup %1431  ;;  %v518_v25 = vadd.f32 1.0, %v1430_v21  ;;  %v594_v28 = vpack.c.bf16 %v558_v19, %v557_v11  ;;  %v852_v19 = vld [vmem:[%s2153_s28 + $0x38] sm:$0xff] }
 0x1ac   : > { %v1434_v32 = vpop.eup %1433  ;;  %v517_v33 = vadd.f32 1.0, %v1432_v24  ;;  %1175 = vmatpush3.bf16.msra.mxu0 %v593_v14  ;;  %v851_v14 = vld [vmem:[%s2153_s28 + $0x30] sm:$0xff] }
 0x1ad   : > { %v1436_v34 = vpop.eup %1435  ;;  %1443 = vrcp.f32 %v518_v25  ;;  %1176 = vmatprep.subr.bf16.mxu0 %v594_v28  ;;  %v559_v12 = vmul.f32 %v1434_v32, %v2204_v17  ;;  %v853_v25 = vld [vmem:[%s2153_s28 + $0x40] sm:$0xff]  ;;  %v855_v32 = vld [vmem:[%s2153_s28 + $0x50] sm:$0xff] }
 0x1ae   : > { %1445 = vrcp.f32 %v517_v33  ;;  %v562_v36 = vmul.f32 %v1436_v34, %v2210_v22 }
 0x1af   : > { %v595_v35 = vpack.c.bf16 %v560_v29, %v559_v12  ;;  %v856_v12 = vld [vmem:[%s2153_s28 + $0x58] sm:$0xff] }
 0x1b0   : > { %v1438_v37 = vpop.eup %1437  ;;  %1177 = vmatpush3.bf16.msra.mxu0 %v594_v28  ;;  %v854_v28 = vld [vmem:[%s2153_s28 + $0x48] sm:$0xff] }
 0x1b1   : > { %v1440_v13 = vpop.eup %1439  ;;  %1178 = vmatprep.subr.bf16.mxu0 %v595_v35  ;;  %v561_v38 = vmul.f32 %v1438_v37, %v2212_v23 }
 0x1b2   : > { %v564_v16 = vmul.f32 %v1440_v13, %v2216_v26 }
 0x1b3   : > { %v1442_v39 = vpop.eup %1441  ;;  %v596_v40 = vpack.c.bf16 %v562_v36, %v561_v38 }
 0x1b4   : > { %1179 = vmatpush3.bf16.msra.mxu0 %v595_v35  ;;  %v563_v41 = vmul.f32 %v1442_v39, %v2218_v27  ;;  %v1358_v27 = vld [vmem:[%s2136_s7 + $0x18] sm:$0xff]   ;;  %v858_v39 = vld [vmem:[%s2153_s28 + $0x68] sm:$0xff] }
 0x1b5   : > { %1180 = vmatprep.subr.bf16.mxu0 %v596_v40 }
 0x1b6   : > { %v597_v17 = vpack.c.bf16 %v564_v16, %v563_v41  ;;  %v857_v16 = vld [vmem:[%s2153_s28 + $0x60] sm:$0xff]  ;;  %v859_v41 = vld [vmem:[%s2153_s28 + $0x70] sm:$0xff] }
 0x1b7   : > { %v1444_v42 = vpop.eup %1443 }
 0x1b8   : > { %v1446_v22 = vpop.eup %1445  ;;  %1181 = vmatpush3.bf16.msra.mxu0 %v596_v40  ;;  %v566_v43 = vmul.f32 %v1444_v42, %v2222_v30 }
 0x1b9   : > { %1182 = vmatprep.subr.bf16.mxu0 %v597_v17  ;;  %v565_v23 = vmul.f32 %v1446_v22, %v2224_v31  ;;  %v860_v22 = vld [vmem:[%s2153_s28 + $0x78] sm:$0xff] }
 0x1bb   : > { %v598_v26 = vpack.c.bf16 %v566_v43, %v565_v23 }
 0x1bc   : > { %1183 = vmatpush3.bf16.msra.mxu0 %v597_v17 }
 0x1bd   : > { %1184 = vmatprep.subr.bf16.mxu0 %v598_v26 }
 0x1c0   : > { %1185 = vmatpush3.bf16.msra.mxu0 %v598_v26 }
 0x1c3   : > { %1187 = vmatmul.mubr.bf16.vlgmr.msra.gmra.mrb[0].mxu0 %v1356_v44 }
 0x1c4   : > { %1190 = vmatprep.mubr.bf16.mxu0 %v1357_v45 }
 0x1cb   : > { %1191 = vmatmul.mubr.bf16.gmra.mrb[4].mxu0 %v1358_v27 }
 0x296   : > { %v1188_v30 = vpop.f32.mrb[0].mxu0 }
 0x297   : > { %v657_v49 = vpop.f32.mrb[1].mxu0 }
 0x298   : > { %v1189_v50 = vpop.f32.mrb[2].mxu0 }
 0x299   : > { %v689_v31 = vpack.c.bf16 %v1189_v50, %v1188_v30  ;;  %v660_v51 = vpop.f32.mrb[3].mxu0 }
 0x29a   : > { %v688_v52 = vpack.c.bf16 %v660_v51, %v657_v49 }
 0x29c   : > { %805 = vmatmul.mubr.bf16.vlgmr.msra.gmra.mrb[0].mxu1 %v688_v52 }
 0x29d   : > { %814 = vmatprep.mubr.bf16.mxu1 %v1738_v48 }
 0x29e   : > { %v1192_v53 = vpop.f32.mrb[4].mxu0 }
 0x29f   : > { %v673_v54 = vpop.f32.mrb[5].mxu0 }
 0x2a0   : > { %v1193_v55 = vpop.f32.mrb[6].mxu0 }
 0x2a1   : > { %v691_v56 = vpack.c.bf16 %v1193_v55, %v1192_v53  ;;  %v676_v57 = vpop.f32.mrb[7].mxu0 }
 0x2a2   : > { %v690_v58 = vpack.c.bf16 %v676_v57, %v673_v54 }
 0x2a4   : > { %815 = vmatmul.mubr.bf16.gmra.mrb[4].mxu1 %v689_v31 }
 0x2a5   : > { %824 = vmatprep.mubr.bf16.mxu1 %v1738_v48 }
 0x2ac   : > { %825 = vmatmul.mubr.bf16.gmra.mrb[8].mxu1 %v690_v58 }
 0x2ad   : > { %834 = vmatprep.mubr.bf16.mxu1 %v1738_v48 }
 0x2b4   : > { %835 = vmatmul.mubr.bf16.gmra.mrb[12].mxu1 %v691_v56 }
 0x36f   : > { %v806_v61 = vpop.f32.mrb[0].mxu1 }
 0x370   : > { %v861_v63 = vadd.f32 %v845_v59, %v806_v61  ;;  %v808_v0 = vpop.f32.mrb[1].mxu1 }
 0x371   : > { %v862_v4 = vadd.f32 %v846_v60, %v808_v0  ;;  %v810_v1 = vpop.f32.mrb[2].mxu1 }
 0x372   : > { %877 = vst [vmem:[%s2153_s28] sm:$0xff] %v861_v63  ;;  %v863_v5 = vadd.f32 %v847_v62, %v810_v1  ;;  %v812_v3 = vpop.f32.mrb[3].mxu1 }
 0x373   : > { %878 = vst [vmem:[%s2153_s28 + $0x8] sm:$0xff] %v862_v4  ;;  %v864_v7 = vadd.f32 %v848_v2, %v812_v3 }
 0x374   : > { %879 = vst [vmem:[%s2153_s28 + $0x10] sm:$0xff] %v863_v5 }
 0x375   : > { %880 = vst [vmem:[%s2153_s28 + $0x18] sm:$0xff] %v864_v7 }
 0x377   : > { %v816_v9 = vpop.f32.mrb[4].mxu1 }
 0x378   : > { %v865_v15 = vadd.f32 %v849_v8, %v816_v9  ;;  %v818_v18 = vpop.f32.mrb[5].mxu1 }
 0x379   : > { %v866_v10 = vadd.f32 %v850_v6, %v818_v18  ;;  %v820_v20 = vpop.f32.mrb[6].mxu1 }
 0x37a   : > { %881 = vst [vmem:[%s2153_s28 + $0x20] sm:$0xff] %v865_v15  ;;  %v867_v11 = vadd.f32 %v851_v14, %v820_v20  ;;  %v822_v21 = vpop.f32.mrb[7].mxu1 }
 0x37b   : > { %882 = vst [vmem:[%s2153_s28 + $0x28] sm:$0xff] %v866_v10  ;;  %v868_v24 = vadd.f32 %v852_v19, %v822_v21 }
 0x37c   : > { %883 = vst [vmem:[%s2153_s28 + $0x30] sm:$0xff] %v867_v11 }
 0x37d   : > { %884 = vst [vmem:[%s2153_s28 + $0x38] sm:$0xff] %v868_v24 }
 0x37f   : > { %v826_v29 = vpop.f32.mrb[8].mxu1 }
 0x380   : > { %v869_v33 = vadd.f32 %v853_v25, %v826_v29  ;;  %v828_v34 = vpop.f32.mrb[9].mxu1 }
 0x381   : > { %v870_v35 = vadd.f32 %v854_v28, %v828_v34  ;;  %v830_v36 = vpop.f32.mrb[10].mxu1 }
 0x382   : > { %885 = vst [vmem:[%s2153_s28 + $0x40] sm:$0xff] %v869_v33  ;;  %v871_v37 = vadd.f32 %v855_v32, %v830_v36  ;;  %v832_v13 = vpop.f32.mrb[11].mxu1 }
 0x383   : > { %886 = vst [vmem:[%s2153_s28 + $0x48] sm:$0xff] %v870_v35  ;;  %v872_v38 = vadd.f32 %v856_v12, %v832_v13 }
 0x384   : > { %887 = vst [vmem:[%s2153_s28 + $0x50] sm:$0xff] %v871_v37 }
 0x385   : > { %888 = vst [vmem:[%s2153_s28 + $0x58] sm:$0xff] %v872_v38 }
 0x387   : > { %v836_v40 = vpop.f32.mrb[12].mxu1 }
 0x388   : > { %v873_v17 = vadd.f32 %v857_v16, %v836_v40  ;;  %v838_v42 = vpop.f32.mrb[13].mxu1 }
 0x389   : > { %v874_v43 = vadd.f32 %v858_v39, %v838_v42  ;;  %v840_v23 = vpop.f32.mrb[14].mxu1 }
 0x38a   : > { %889 = vst [vmem:[%s2153_s28 + $0x60] sm:$0xff] %v873_v17  ;;  %v875_v26 = vadd.f32 %v859_v41, %v840_v23  ;;  %v842_v44 = vpop.f32.mrb[15].mxu1 }
 0x38b   : > { %890 = vst [vmem:[%s2153_s28 + $0x68] sm:$0xff] %v874_v43  ;;  %v876_v45 = vadd.f32 %v860_v22, %v842_v44 }
 0x38c   : > { %891 = vst [vmem:[%s2153_s28 + $0x70] sm:$0xff] %v875_v26 }
 0x38d   : > { %892 = vst [vmem:[%s2153_s28 + $0x78] sm:$0xff] %v876_v45 }
 0x38e PF: > { %s2491_s30 = sld [smem:[#allocation24_spill]] }
 0x394   : > { %p1148_p2 = scmp.ne.s32.totalorder %s2491_s30, 2 }
 0x395   : > { %v897_v27 = vld [vmem:[%s2153_s28] sm:$0xff] (!%p1148_p2)  ;;  %v898_v46 = vld [vmem:[%s2153_s28 + $0x8] sm:$0xff] (!%p1148_p2)  ;;  %v899_v47 = vld [vmem:[%s2153_s28 + $0x10] sm:$0xff] (!%p1148_p2) }
 0x396   : > { %896 = sbr.rel (%p1148_p2) target bundleno = 928 (0x3a0), region = 60  ;;  %v913_v48 = vmax.f32 (!%p1148_p2), %v897_v27, 0.0  ;;  %v914_v30 = vmax.f32 (!%p1148_p2), %v898_v46, 0.0  ;;  %v915_v49 = vmax.f32 (!%p1148_p2), %v899_v47, 0.0  ;;  %v900_v50 = vld [vmem:[%s2153_s28 + $0x18] sm:$0xff] (!%p1148_p2)  ;;  %v901_v31 = vld [vmem:[%s2153_s28 + $0x20] sm:$0xff] (!%p1148_p2) }
 0x397   : > { %v902_v51 = vld [vmem:[%s2153_s28 + $0x28] sm:$0xff] (!%p1148_p2)  ;;  %v916_v52 = vmax.f32 (!%p1148_p2), %v900_v50, 0.0  ;;  %v917_v53 = vmax.f32 (!%p1148_p2), %v901_v31, 0.0  ;;  %v903_v55 = vld [vmem:[%s2153_s28 + $0x30] sm:$0xff] (!%p1148_p2)  ;;  %v904_v56 = vld [vmem:[%s2153_s28 + $0x38] sm:$0xff] (!%p1148_p2) }
 0x398   : > { %v918_v54 = vmax.f32 (!%p1148_p2), %v902_v51, 0.0  ;;  %v905_v57 = vld [vmem:[%s2153_s28 + $0x40] sm:$0xff] (!%p1148_p2)  ;;  %929 = vst [vmem:[%s2153_s28] sm:$0xff] (!%p1148_p2), %v913_v48  ;;  %930 = vst [vmem:[%s2153_s28 + $0x8] sm:$0xff] (!%p1148_p2), %v914_v30  ;;  %v919_v58 = vmax.f32 (!%p1148_p2), %v903_v55, 0.0  ;;  %v920_v59 = vmax.f32 (!%p1148_p2), %v904_v56, 0.0  ;;  %v906_v61 = vld [vmem:[%s2153_s28 + $0x48] sm:$0xff] (!%p1148_p2) }
 0x399   : > { %931 = vst [vmem:[%s2153_s28 + $0x10] sm:$0xff] (!%p1148_p2), %v915_v49  ;;  %v921_v60 = vmax.f32 (!%p1148_p2), %v905_v57, 0.0  ;;  %v907_v62 = vld [vmem:[%s2153_s28 + $0x50] sm:$0xff] (!%p1148_p2)  ;;  %v908_v63 = vld [vmem:[%s2153_s28 + $0x58] sm:$0xff] (!%p1148_p2)  ;;  %932 = vst [vmem:[%s2153_s28 + $0x18] sm:$0xff] (!%p1148_p2), %v916_v52  ;;  %v922_v0 = vmax.f32 (!%p1148_p2), %v906_v61, 0.0 }
 0x39a   : > { %933 = vst [vmem:[%s2153_s28 + $0x20] sm:$0xff] (!%p1148_p2), %v917_v53  ;;  %934 = vst [vmem:[%s2153_s28 + $0x28] sm:$0xff] (!%p1148_p2), %v918_v54  ;;  %v923_v2 = vmax.f32 (!%p1148_p2), %v907_v62, 0.0  ;;  %v924_v4 = vmax.f32 (!%p1148_p2), %v908_v63, 0.0  ;;  %v909_v1 = vld [vmem:[%s2153_s28 + $0x60] sm:$0xff] (!%p1148_p2)  ;;  %v910_v5 = vld [vmem:[%s2153_s28 + $0x68] sm:$0xff] (!%p1148_p2) }
 0x39b   : > { %v911_v3 = vld [vmem:[%s2153_s28 + $0x70] sm:$0xff] (!%p1148_p2)  ;;  %935 = vst [vmem:[%s2153_s28 + $0x30] sm:$0xff] (!%p1148_p2), %v919_v58  ;;  %936 = vst [vmem:[%s2153_s28 + $0x38] sm:$0xff] (!%p1148_p2), %v920_v59  ;;  %v925_v7 = vmax.f32 (!%p1148_p2), %v909_v1, 0.0  ;;  %v926_v8 = vmax.f32 (!%p1148_p2), %v910_v5, 0.0  ;;  %v912_v9 = vld [vmem:[%s2153_s28 + $0x78] sm:$0xff] (!%p1148_p2) }
 0x39c   : > { %937 = vst [vmem:[%s2153_s28 + $0x40] sm:$0xff] (!%p1148_p2), %v921_v60  ;;  %v927_v6 = vmax.f32 (!%p1148_p2), %v911_v3, 0.0  ;;  %938 = vst [vmem:[%s2153_s28 + $0x48] sm:$0xff] (!%p1148_p2), %v922_v0  ;;  %v928_v14 = vmax.f32 (!%p1148_p2), %v912_v9, 0.0 }
 0x39d   : > { %939 = vst [vmem:[%s2153_s28 + $0x50] sm:$0xff] %v923_v2  ;;  %940 = vst [vmem:[%s2153_s28 + $0x58] sm:$0xff] %v924_v4 }
 0x39e   : > { %941 = vst [vmem:[%s2153_s28 + $0x60] sm:$0xff] %v925_v7  ;;  %942 = vst [vmem:[%s2153_s28 + $0x68] sm:$0xff] %v926_v8 }
 0x39f   : > { %943 = vst [vmem:[%s2153_s28 + $0x70] sm:$0xff] %v927_v6  ;;  %944 = vst [vmem:[%s2153_s28 + $0x78] sm:$0xff] %v928_v14 }
 0x3a0 PF: > { %s2492_s7 = sld [smem:[#allocation25_spill]]  ;;  %s2493_s5 = sld [smem:[#allocation36_spill]] }
 0x3a1   : > { %s960_s29 = sshll.u32 %s2153_s28, 4  ;;  %s2340_s9 = scalar_lea.sflag [#allocation8], %s334_s4  ;;  %s2336_s29 = int_to_ptr.vmem [resolvable:$true] %s960_s29 }
 0x3a2   : > { %s1569_s11 = scalar_lea.vmem %s2336_s29, 2048  ;;  %p2494_p6 = scmp.ne.s32.totalorder %s2461_s21, 0 }
 0x3a3   : > { %p1570_p3 = scmp.ne.s32.totalorder %s2336_s29, %s1569_s11  ;;  %s1739_s17 = smov [#allocation12]  }
 0x3a4   : > { %s1573_s18 = sshll.u32 %s1739_s17, 4  ;;  %s1574_s18 = int_to_ptr.vmem [resolvable:$false] %s1573_s18 }
 0x3a5   : > { %p1571_p12 = pnand %p1570_p3, %p2494_p6  ;;  %s1575_s24 = scalar_lea.vmem %s1574_s18, 4096 }
 0x3a6   : > { %s1157_s13 = sshll.u32 %s2492_s7, 11  ;;  %p1576_p4 = scmp.lt.s32.totalorder %s2336_s29, %s1574_s18 }
 0x3a7   : > { %s2333_s10 = scalar_lea.hbm %s2493_s5, %s1157_s13  ;;  %p1572_p9 = pneg %p1571_p12 }
 0x3a8   : > { %p1577_p10 = scmp.lt.s32.totalorder %s1575_s24, %s1569_s11 }
 0x3aa   : > { %p1578_p1 = por %p1577_p10, %p1576_p4 }
 0x3ac   : > { %p1579_p5 = pnand %p1578_p1, %p1572_p9 }
 0x3ae   : > { %1582 = shalt.err (!%p1579_p5)
}
 0x3af   : > { %s1583_s4 = scalar_lea.hbm %s2333_s10, 2048  ;;  %s1587_s16 = scalar_lea.hbm %s2493_s5, 4096 }
 0x3b0   : > { %p1584_p0 = scmp.ne.s32.totalorder %s2333_s10, %s1583_s4  ;;  %p1588_p11 = scmp.lt.u32.totalorder %s2333_s10, %s2493_s5 }
 0x3b1   : > { %p1589_p13 = scmp.lt.u32.totalorder %s1587_s16, %s1583_s4  ;;  %p1591_p3 = scmp.lt.u32.totalorder %s1583_s4, %s2333_s10 }
 0x3b2   : > { %p1585_p7 = pnand %p1584_p0, %p2494_p6 }
 0x3b3   : > { %p1590_p2 = por %p1589_p13, %p1588_p11 }
 0x3b4   : > { %p1586_p8 = pneg %p1585_p7 }
 0x3b5   : > { %p1592_p12 = por %p1591_p3, %p1590_p2 }
 0x3b7   : > { %p1593_p9 = pnand %p1592_p12, %p1586_p8 }
 0x3b9   : > { %1596 = shalt.err (!%p1593_p9)
}
 0x3ba   : > { %s1740_s26 = smov 256   ;;  %s1741_s3 = smov 16  }
 0x3bb   : > { %1206 = dma.vmem_to_hbm [thread:$0]  (%p2494_p6), %s2336_s29, 2048, %s2333_s10, %s2340_s9, %s1740_s26, %s1740_s26, %s1741_s3  }
 0x3bc PF: > { %p1230_p4 = scmp.ge.s32.totalorder %s1725_s8, 2  ;;  %s975_s15 = sand.u32 1, %s1673_s2  }
 0x3bd   : > { %p2495_p10 = scmp.ne.s32.totalorder %s2463_s1, 0  ;;  %s976_s30 = scalar_lea.sflag [#allocation8], %s975_s15 }
 0x3bf   : > { %p1224_p1 = pnand %p1230_p4, %p2495_p10 }
 0x3c1   : > { %1668 = dma.done.wait (!%p1224_p1), %s976_s30, 2048  }
 0x3c2   : > { %1670 = vsyncadd (!%p1224_p1), %s976_s30, 4294965248  ;;  %s36_s8 = sadd.s32 1, %s1725_s8   ;;  %s2497_s21 = sld [smem:[#allocation22_spill]] }
 0x3c3   : > { %p2369_p5 = scmp.ge.s32.totalorder %s36_s8, 8   ;;  %s2498_s20 = sld [smem:[#allocation31_spill]] }
 0x3c4   : > { %s2499_s13 = sld [smem:[#allocation32_spill]]  ;;  %s2500_s27 = sld [smem:[#allocation23_spill]] }
 0x3c5   : > { %s2501_s26 = sld [smem:[#allocation29_spill]]  ;;  %s2502_s1 = sld [smem:[#allocation26_spill]] }
 0x3c6   : > { %s2503_s28 = sld [smem:[#allocation27_spill]]  ;;  %s2504_s29 = sld [smem:[#allocation28_spill]] }
 0x3c7   : > { %s2505_s30 = sld [smem:[#allocation30_spill]]  ;;  %s2506_s2 = smov %s1677_s19 }
 0x3c8   : > { %s2507_s19 = smov %s2497_s21  ;;  %s2508_s21 = smov %s1689_s22 }
 0x3c9   : > { %s2509_s22 = smov %s1693_s23  ;;  %s2511_s24 = smov %s1701_s25 }
 0x3ca   : > { %s2510_s23 = smov %s2499_s13  ;;  %s2512_s25 = smov %s2500_s27 }
 0x3cb   : > { %s2513_s27 = smov %s2502_s1  ;;  %35 = sbr.rel (!%p2369_p5) target bundleno = 45 (0x2d), region = 112 }
 0x3d2   :  { %981 = vsyncpa [#allocation7], 1 }
 0x3d3   :  { %983 = vsyncpa [#allocation7 + $0x1], 1 }
 0x3d4   :  { %984 = vsyncpa [#allocation10], 1 }
 0x3d5   :  { %986 = vsyncpa [#allocation10 + $0x1], 1 }
 0x3d6   :  { %987 = vsyncpa [#allocation8], 1 }
 0x3d7   :  { %989 = vsyncpa [#allocation8 + $0x1], 1 }

</bundles_post_ra>
